<compile_context>
chip_gen: v6e
topology: v6e:2x2x1
jax: 0.10.0
libtpu: 0.0.40
codegen_flags: <defaults>
</compile_context>

<pallas_src>
import functools

import jax
import jax.numpy as jnp
from jax.experimental import pallas as pl
from jax.experimental.pallas import tpu as pltpu

IGNORE_LABEL = 255
_VMEM_LIMIT_BYTES = 32 * 1024 * 1024   # keep headroom under v7x's 64 MiB physical VMEM
_MAX_SUBLANE_BLOCKS = 2048             # cap per-step (S,128) f32 temporaries at ~1 MiB each


def _target_block_bytes():
    """Per-generation logits-block budget (kernel is HBM-streaming bound)."""
    try:
        kind = jax.devices()[0].device_kind.lower()
    except Exception:  # pragma: no cover - defensive
        kind = ""
    if "v7" in kind:
        return 6 * 1024 * 1024
    if "v6" in kind:
        return 3 * 1024 * 1024
    return 2 * 1024 * 1024             # v5e and older / unknown


def _ce2d_kernel(logits_ref, tgt_ref, out_ref, *, ignore_label):
    """One (batch, pixel-tile) grid step.

    logits_ref: (c, S, 128)  pixels dense on sublanes+lanes, classes outermost
    tgt_ref:    (S, 128)     int32 labels
    out_ref:    (2, 128)     row 0 = per-lane loss sums, row 1 = per-lane counts
    """
    c = logits_ref.shape[0]

    t = tgt_ref[...]                                        # (S, 128) int32
    valid = (t >= 0) & (t != ignore_label)                  # padded tail is ignore -> invalid

    # Running max over the class axis: c-1 elementwise VPU maxes in input dtype.
    m = logits_ref[0]
    for k in range(1, c):
        m = jnp.maximum(m, logits_ref[k])
    m = m.astype(jnp.float32)                               # (S, 128) f32

    # Single pass over class slabs: reuse d = x_k - m for both exp() and the
    # target-class select (loss = log(sum exp(d)) - d_target).
    e_sum = jnp.zeros_like(m)
    sel_d = jnp.zeros_like(m)
    for k in range(c):
        d = logits_ref[k].astype(jnp.float32) - m           # (S, 128) f32
        e_sum = e_sum + jnp.exp(d)
        sel_d = sel_d + jnp.where(t == k, d, 0.0)
    # NOTE: labels with 0 <= t < ignore_label but t >= c are undefined behavior
    # in PyTorch (device assert); here they contribute log-sum-exp(d) >= 0.

    per_pixel = jnp.where(valid, jnp.log(e_sum) - sel_d, 0.0)      # (S, 128)

    loss_row = jnp.sum(per_pixel, axis=0, keepdims=True)           # (1, 128)
    cnt_row = jnp.sum(valid.astype(jnp.float32), axis=0, keepdims=True)

    row = jax.lax.broadcasted_iota(jnp.int32, (2, 128), 0)
    out_ref[...] = jnp.where(row == 0, loss_row, cnt_row)          # full-lane store


def cross_entropy_2d(predict, target, ignore_label=IGNORE_LABEL):
    """predict: (n, c, h, w) float; target: (n, h, w) int. Returns scalar f32."""
    n, c, h, w = predict.shape
    assert target.shape == (n, h, w)
    hw = h * w

    itemsize = jnp.dtype(predict.dtype).itemsize
    blk_bytes = _target_block_bytes()

    # S = number of 128-pixel sublane blocks per grid step; multiple of 8 and
    # sized so one logits block is ~blk_bytes.
    s_pref = max(8, (blk_bytes // max(c * 128 * itemsize, 1)) // 8 * 8)
    s_pref = min(s_pref, _MAX_SUBLANE_BLOCKS)
    nblk_min = pl.cdiv(hw, 128)

    if nblk_min <= s_pref:
        S = nblk_min            # full extent: (8,128) rule satisfied by full dims
        num_tiles = 1
    else:
        S = s_pref
        num_tiles = pl.cdiv(nblk_min, S)

    # Megacore/2-TC: make sure there are >= 2 grid steps when possible.
    if n * num_tiles < 2 and nblk_min >= 16:
        S = max(8, (nblk_min // 2) // 8 * 8)
        num_tiles = pl.cdiv(nblk_min, S)

    nblk = num_tiles * S
    hw_pad = nblk * 128

    # Pure reshapes (no transpose, no class padding, no upcast in HBM); pixels
    # are padded once only when hw is not already tile-aligned, with padded
    # targets marked ignore so the kernel needs no tail mask.
    logits = predict.reshape(n, c, hw)
    tgt = target.reshape(n, hw).astype(jnp.int32)
    pad = hw_pad - hw
    if pad:
        logits = jnp.pad(logits, ((0, 0), (0, 0), (0, pad)))
        tgt = jnp.pad(tgt, ((0, 0), (0, pad)), constant_values=ignore_label)
    logits = logits.reshape(n, c, nblk, 128)
    tgt = tgt.reshape(n, nblk, 128)

    kernel = functools.partial(_ce2d_kernel, ignore_label=ignore_label)

    partials = pl.pallas_call(
        kernel,
        out_shape=jax.ShapeDtypeStruct((n, num_tiles, 2, 128), jnp.float32),
        grid_spec=pltpu.PrefetchScalarGridSpec(
            num_scalar_prefetch=0,
            grid=(n, num_tiles),
            in_specs=[
                pl.BlockSpec((None, c, S, 128), lambda b, j: (b, 0, j, 0)),
                pl.BlockSpec((None, S, 128), lambda b, j: (b, j, 0)),
            ],
            out_specs=pl.BlockSpec((None, None, 2, 128),
                                   lambda b, j: (b, j, 0, 0)),
        ),
        compiler_params=pltpu.CompilerParams(
            dimension_semantics=("parallel", "parallel"),
            vmem_limit_bytes=_VMEM_LIMIT_BYTES),
    )(logits, tgt)

    s = jnp.sum(partials[:, :, 0, :])
    k = jnp.sum(partials[:, :, 1, :])
    # PyTorch returns torch.zeros(1) when no valid targets; scalar 0.0 here.
    return jnp.where(k > 0, s / jnp.maximum(k, 1.0), jnp.float32(0.0))


def _reference(predict, target, ignore_label=IGNORE_LABEL):
    n, c, h, w = predict.shape
    logits = jnp.transpose(predict, (0, 2, 3, 1)).reshape(-1, c)
    tgt = target.reshape(-1)
    valid = (tgt >= 0) & (tgt != ignore_label)
    logp = jax.nn.log_softmax(logits.astype(jnp.float32), axis=-1)
    nll = -jnp.take_along_axis(
        logp, jnp.clip(tgt, 0, c - 1)[:, None], axis=-1)[:, 0]
    nll = jnp.where(valid, nll, 0.0)
    cnt = jnp.sum(valid)
    return jnp.where(cnt > 0, jnp.sum(nll) / cnt, 0.0)


if __name__ == "__main__":
    key = jax.random.PRNGKey(0)
    k1, k2, k3 = jax.random.split(key, 3)

    n, c, h, w = 2, 4, 16, 16
    predict = jax.random.normal(k1, (n, c, h, w), dtype=jnp.float32)
    target = jax.random.randint(k2, (n, h, w), 0, c, dtype=jnp.int32)
    # sprinkle some ignore labels
    ignore_mask = jax.random.bernoulli(k3, 0.1, (n, h, w))
    target = jnp.where(ignore_mask, IGNORE_LABEL, target)

    loss = cross_entropy_2d(predict, target)
    jax.block_until_ready(loss)

    ref = _reference(predict, target)
    assert jnp.allclose(loss, ref, atol=1e-5, rtol=1e-5), (loss, ref)

    # TODO(synk): the optional `weight`/`num_class` online class-frequency
    # branch (which prints per-class frequencies and rescales) is not implemented.
    print("KERNEL_OK")
</pallas_src>

<mosaic_0001>
module attributes {stable_mosaic.version = 11 : i64} {
  func.func @_ce2d_kernel(%arg0: i32, %arg1: i32, %arg2: memref<1x4x2x128xf32, #tpu.memory_space<vmem>>, %arg3: memref<1x2x128xi32, #tpu.memory_space<vmem>>, %arg4: memref<1x1x2x128xf32, #tpu.memory_space<vmem>>) attributes {dimension_semantics = [#tpu.dimension_semantics<parallel>, #tpu.dimension_semantics<parallel>], iteration_bounds = array<i64: 2, 1>, scalar_prefetch = 0 : i64, scratch_operands = 0 : i64, tpu.core_type = #tpu.core_type<tc>, window_params = [{transform_indices = @transform_0, window_bounds = array<i64: 1, 4, 2, 128>}, {transform_indices = @transform_1, window_bounds = array<i64: 1, 2, 128>}, {transform_indices = @transform_2, window_bounds = array<i64: 1, 1, 2, 128>}]} {
    %c0 = arith.constant 0 : index
    %c0_0 = arith.constant 0 : index
    %c0_1 = arith.constant 0 : index
    %0 = vector.load %arg3[%c0, %c0_0, %c0_1] : memref<1x2x128xi32, #tpu.memory_space<vmem>>, vector<1x2x128xi32>
    %1 = vector.shape_cast %0 : vector<1x2x128xi32> to vector<2x128xi32>
    %c0_i32 = arith.constant 0 : i32
    %2 = vector.broadcast %c0_i32 : i32 to vector<2x128xi32>
    %3 = arith.cmpi sge, %1, %2 : vector<2x128xi32>
    %c255_i32 = arith.constant 255 : i32
    %4 = vector.broadcast %c255_i32 : i32 to vector<2x128xi32>
    %5 = arith.cmpi ne, %1, %4 : vector<2x128xi32>
    %6 = arith.andi %3, %5 : vector<2x128xi1>
    %c0_2 = arith.constant 0 : index
    %c0_3 = arith.constant 0 : index
    %c0_4 = arith.constant 0 : index
    %c0_5 = arith.constant 0 : index
    %7 = vector.load %arg2[%c0_2, %c0_3, %c0_4, %c0_5] : memref<1x4x2x128xf32, #tpu.memory_space<vmem>>, vector<1x1x2x128xf32>
    %8 = vector.shape_cast %7 : vector<1x1x2x128xf32> to vector<2x128xf32>
    %c0_6 = arith.constant 0 : index
    %c1 = arith.constant 1 : index
    %c0_7 = arith.constant 0 : index
    %c0_8 = arith.constant 0 : index
    %9 = vector.load %arg2[%c0_6, %c1, %c0_7, %c0_8] : memref<1x4x2x128xf32, #tpu.memory_space<vmem>>, vector<1x1x2x128xf32>
    %10 = vector.shape_cast %9 : vector<1x1x2x128xf32> to vector<2x128xf32>
    %11 = arith.maximumf %8, %10 : vector<2x128xf32>
    %c0_9 = arith.constant 0 : index
    %c2 = arith.constant 2 : index
    %c0_10 = arith.constant 0 : index
    %c0_11 = arith.constant 0 : index
    %12 = vector.load %arg2[%c0_9, %c2, %c0_10, %c0_11] : memref<1x4x2x128xf32, #tpu.memory_space<vmem>>, vector<1x1x2x128xf32>
    %13 = vector.shape_cast %12 : vector<1x1x2x128xf32> to vector<2x128xf32>
    %14 = arith.maximumf %11, %13 : vector<2x128xf32>
    %c0_12 = arith.constant 0 : index
    %c3 = arith.constant 3 : index
    %c0_13 = arith.constant 0 : index
    %c0_14 = arith.constant 0 : index
    %15 = vector.load %arg2[%c0_12, %c3, %c0_13, %c0_14] : memref<1x4x2x128xf32, #tpu.memory_space<vmem>>, vector<1x1x2x128xf32>
    %16 = vector.shape_cast %15 : vector<1x1x2x128xf32> to vector<2x128xf32>
    %17 = arith.maximumf %14, %16 : vector<2x128xf32>
    %cst = arith.constant 0.000000e+00 : f32
    %18 = vector.broadcast %cst : f32 to vector<2x128xf32>
    %cst_15 = arith.constant 0.000000e+00 : f32
    %19 = vector.broadcast %cst_15 : f32 to vector<2x128xf32>
    %c0_16 = arith.constant 0 : index
    %c0_17 = arith.constant 0 : index
    %c0_18 = arith.constant 0 : index
    %c0_19 = arith.constant 0 : index
    %20 = vector.load %arg2[%c0_16, %c0_17, %c0_18, %c0_19] : memref<1x4x2x128xf32, #tpu.memory_space<vmem>>, vector<1x1x2x128xf32>
    %21 = vector.shape_cast %20 : vector<1x1x2x128xf32> to vector<2x128xf32>
    %22 = arith.subf %21, %17 : vector<2x128xf32>
    %23 = math.exp %22 : vector<2x128xf32>
    %24 = arith.addf %18, %23 : vector<2x128xf32>
    %c0_i32_20 = arith.constant 0 : i32
    %25 = vector.broadcast %c0_i32_20 : i32 to vector<2x128xi32>
    %26 = arith.cmpi eq, %1, %25 : vector<2x128xi32>
    %cst_21 = arith.constant 0.000000e+00 : f32
    %27 = vector.broadcast %cst_21 : f32 to vector<2x128xf32>
    %28 = arith.select %26, %22, %27 : vector<2x128xi1>, vector<2x128xf32>
    %29 = arith.addf %19, %28 : vector<2x128xf32>
    %c0_22 = arith.constant 0 : index
    %c1_23 = arith.constant 1 : index
    %c0_24 = arith.constant 0 : index
    %c0_25 = arith.constant 0 : index
    %30 = vector.load %arg2[%c0_22, %c1_23, %c0_24, %c0_25] : memref<1x4x2x128xf32, #tpu.memory_space<vmem>>, vector<1x1x2x128xf32>
    %31 = vector.shape_cast %30 : vector<1x1x2x128xf32> to vector<2x128xf32>
    %32 = arith.subf %31, %17 : vector<2x128xf32>
    %33 = math.exp %32 : vector<2x128xf32>
    %34 = arith.addf %24, %33 : vector<2x128xf32>
    %c1_i32 = arith.constant 1 : i32
    %35 = vector.broadcast %c1_i32 : i32 to vector<2x128xi32>
    %36 = arith.cmpi eq, %1, %35 : vector<2x128xi32>
    %cst_26 = arith.constant 0.000000e+00 : f32
    %37 = vector.broadcast %cst_26 : f32 to vector<2x128xf32>
    %38 = arith.select %36, %32, %37 : vector<2x128xi1>, vector<2x128xf32>
    %39 = arith.addf %29, %38 : vector<2x128xf32>
    %c0_27 = arith.constant 0 : index
    %c2_28 = arith.constant 2 : index
    %c0_29 = arith.constant 0 : index
    %c0_30 = arith.constant 0 : index
    %40 = vector.load %arg2[%c0_27, %c2_28, %c0_29, %c0_30] : memref<1x4x2x128xf32, #tpu.memory_space<vmem>>, vector<1x1x2x128xf32>
    %41 = vector.shape_cast %40 : vector<1x1x2x128xf32> to vector<2x128xf32>
    %42 = arith.subf %41, %17 : vector<2x128xf32>
    %43 = math.exp %42 : vector<2x128xf32>
    %44 = arith.addf %34, %43 : vector<2x128xf32>
    %c2_i32 = arith.constant 2 : i32
    %45 = vector.broadcast %c2_i32 : i32 to vector<2x128xi32>
    %46 = arith.cmpi eq, %1, %45 : vector<2x128xi32>
    %cst_31 = arith.constant 0.000000e+00 : f32
    %47 = vector.broadcast %cst_31 : f32 to vector<2x128xf32>
    %48 = arith.select %46, %42, %47 : vector<2x128xi1>, vector<2x128xf32>
    %49 = arith.addf %39, %48 : vector<2x128xf32>
    %c0_32 = arith.constant 0 : index
    %c3_33 = arith.constant 3 : index
    %c0_34 = arith.constant 0 : index
    %c0_35 = arith.constant 0 : index
    %50 = vector.load %arg2[%c0_32, %c3_33, %c0_34, %c0_35] : memref<1x4x2x128xf32, #tpu.memory_space<vmem>>, vector<1x1x2x128xf32>
    %51 = vector.shape_cast %50 : vector<1x1x2x128xf32> to vector<2x128xf32>
    %52 = arith.subf %51, %17 : vector<2x128xf32>
    %53 = math.exp %52 : vector<2x128xf32>
    %54 = arith.addf %44, %53 : vector<2x128xf32>
    %c3_i32 = arith.constant 3 : i32
    %55 = vector.broadcast %c3_i32 : i32 to vector<2x128xi32>
    %56 = arith.cmpi eq, %1, %55 : vector<2x128xi32>
    %cst_36 = arith.constant 0.000000e+00 : f32
    %57 = vector.broadcast %cst_36 : f32 to vector<2x128xf32>
    %58 = arith.select %56, %52, %57 : vector<2x128xi1>, vector<2x128xf32>
    %59 = arith.addf %49, %58 : vector<2x128xf32>
    %60 = math.log %54 : vector<2x128xf32>
    %61 = arith.subf %60, %59 : vector<2x128xf32>
    %cst_37 = arith.constant 0.000000e+00 : f32
    %62 = vector.broadcast %cst_37 : f32 to vector<2x128xf32>
    %63 = arith.select %6, %61, %62 : vector<2x128xi1>, vector<2x128xf32>
    %cst_38 = arith.constant dense<0.000000e+00> : vector<128xf32>
    %64 = vector.multi_reduction <add>, %63, %cst_38 [0] : vector<2x128xf32> to vector<128xf32>
    %65 = vector.shape_cast %64 : vector<128xf32> to vector<1x128xf32>
    %66 = arith.extui %6 : vector<2x128xi1> to vector<2x128xi32>
    %67 = arith.sitofp %66 : vector<2x128xi32> to vector<2x128xf32>
    %cst_39 = arith.constant dense<0.000000e+00> : vector<128xf32>
    %68 = vector.multi_reduction <add>, %67, %cst_39 [0] : vector<2x128xf32> to vector<128xf32>
    %69 = vector.shape_cast %68 : vector<128xf32> to vector<1x128xf32>
    %70 = tpu.iota {dimensions = array<i32: 0>} : vector<2x128xi32>
    %c0_i32_40 = arith.constant 0 : i32
    %71 = vector.broadcast %c0_i32_40 : i32 to vector<2x128xi32>
    %72 = arith.cmpi eq, %70, %71 : vector<2x128xi32>
    %73 = vector.shape_cast %65 : vector<1x128xf32> to vector<1x128xf32>
    %74 = vector.broadcast %73 : vector<1x128xf32> to vector<2x128xf32>
    %75 = vector.shape_cast %69 : vector<1x128xf32> to vector<1x128xf32>
    %76 = vector.broadcast %75 : vector<1x128xf32> to vector<2x128xf32>
    %77 = arith.select %72, %74, %76 : vector<2x128xi1>, vector<2x128xf32>
    %c0_41 = arith.constant 0 : index
    %c0_42 = arith.constant 0 : index
    %c0_43 = arith.constant 0 : index
    %c0_44 = arith.constant 0 : index
    %78 = vector.load %arg4[%c0_41, %c0_42, %c0_43, %c0_44] : memref<1x1x2x128xf32, #tpu.memory_space<vmem>>, vector<1x1x2x128xf32>
    %79 = vector.shape_cast %78 : vector<1x1x2x128xf32> to vector<2x128xf32>
    %80 = vector.shape_cast %77 : vector<2x128xf32> to vector<1x1x2x128xf32>
    tpu.vector_store %arg4[%c0_41, %c0_42, %c0_43, %c0_44], %80 {strides = array<i32>} : memref<1x1x2x128xf32, #tpu.memory_space<vmem>>, vector<1x1x2x128xf32>,
    return
  }
  func.func @transform_0(%arg0: i32, %arg1: i32) -> (i32, i32, i32, i32) {
    %c0_i32 = arith.constant 0 : i32
    %c0_i32_0 = arith.constant 0 : i32
    %c0_i32_1 = arith.constant 0 : i32
    return %arg0, %c0_i32, %arg1, %c0_i32_0 : i32, i32, i32, i32
  }
  func.func @transform_1(%arg0: i32, %arg1: i32) -> (i32, i32, i32) {
    %c0_i32 = arith.constant 0 : i32
    %c0_i32_0 = arith.constant 0 : i32
    return %arg0, %arg1, %c0_i32 : i32, i32, i32
  }
  func.func @transform_2(%arg0: i32, %arg1: i32) -> (i32, i32, i32, i32) {
    %c0_i32 = arith.constant 0 : i32
    %c0_i32_0 = arith.constant 0 : i32
    %c0_i32_1 = arith.constant 0 : i32
    return %arg0, %arg1, %c0_i32, %c0_i32_0 : i32, i32, i32, i32
  }
}

</mosaic_0001>

<bundles_post_ra>
// kernel: tpu_custom_call.1
= control target key start
LH: loop header
LB: loop body
LE: loop exit
PB: predicated region body
PF: predicated region fallthrough
CT: control target
= control target key end

     0   :  { %7 = vsyncpa [#allocation3], 0  ;;  %s854_s0 = inlined_call_operand.hbm [shape: f32[2,4,2,128], index: 0, kind: input, shape index: {}]   ;;  %s855_s1 = inlined_call_operand.hbm [shape: s32[2,2,128], index: 1, kind: input, shape index: {}]   ;;  %s856_s2 = inlined_call_operand.hbm [shape: f32[2,1,2,128], index: 2, kind: output, shape index: {}]  }
   0x1   :  { %9 = vsyncpa [#allocation3 + $0x1], 0 }
   0x2   :  { %10 = vsyncpa [#allocation6], 0 }
   0x3   :  { %12 = vsyncpa [#allocation6 + $0x1], 0 }
   0x4   :  { %13 = vsyncpa [#allocation4], 0 }
   0x5   :  { %15 = vsyncpa [#allocation4 + $0x1], 0  ;;  %s672_s9 = smov 0   ;;  %s674_s10 = smov 0  }
   0x6   :  { %s676_s11 = smov 0   ;;  %s678_s12 = smov 0  }
   0x7   :  { %s680_s13 = smov 0   ;;  %s682_s14 = smov 0  }
   0x8 LB: > { %s407_s15 = sadd.s32 4294967295, %s649_s14   ;;  %s408_s16 = sadd.s32 4294967294, %s649_s14   ;;  %s649_s14 = sphi %s682_s14, %s21_s14   ;;  %s645_s13 = sphi %s680_s13, %s870_s13   ;;  %s641_s12 = sphi %s678_s12, %s869_s12   ;;  %s637_s11 = sphi %s676_s11, %s868_s11   ;;  %s633_s10 = sphi %s674_s10, %s867_s10   ;;  %s629_s9 = sphi %s672_s9, %s866_s9  }
   0x9   : > { %s33_s17 = sadd.s32 1, %s645_s13  ;;  %s42_s18 = sadd.s32 1, %s637_s11 }
   0xa   : > { %p35_p0 = scmp.ge.s32.totalorder %s33_s17, 2  ;;  %p49_p1 = scmp.ne.s32.totalorder %s637_s11, %s633_s10 }
   0xb   : > { %p50_p2 = scmp.eq.s32.totalorder %s649_s14, 0  ;;  %p55_p3 = scmp.ne.s32.totalorder %s633_s10, %s629_s9 }
   0xc   : > { %s872_s17 = smov (%p35_p0, %s33_s17), 0  ;;  %p56_p5 = scmp.eq.s32.totalorder %s407_s15, 0 }
   0xd   : > { %p713_p4 = por %p50_p2, %p49_p1  ;;  %s37_s20 = ssub.s32 %s645_s13, %s872_s17 }
   0xe   : > { %p109_p6 = scmp.eq.s32.totalorder %s407_s15, 1  ;;  %p40_p7 = scmp.eq.s32.totalorder %s37_s20, 0 }
   0xf   : > { %p719_p8 = por %p56_p5, %p55_p3  ;;  %p115_p10 = scmp.eq.s32.totalorder %s408_s16, 1 }
  0x10   : > { %p723_p9 = por %p109_p6, %p49_p1  ;;  %p446_p13 = scmp.lt.s32.totalorder %s649_s14, 2 }
  0x11   : > { %s728_s23 = scalar_select %p40_p7, %s637_s11, %s42_s18  }
  0x12   : > { %p730_p11 = por %p115_p10, %p55_p3  ;;  %s737_s25 = sand.u32 1, %s637_s11  }
  0x13   : > { %s411_s26 = sshll.u32 %s737_s25, 3  ;;  %s428_s27 = sshll.u32 %s645_s13, 7 }
  0x14   : > { %s146_s30 = scalar_lea.hbm %s854_s0, %s428_s27  ;;  %s139_s3 = scalar_lea.vmem [#allocation2], %s411_s26 }
  0x15   : > { %s147_s4 = sshll.u32 %s139_s3, 4  ;;  %p746_p0 = pnand %p446_p13, %p713_p4  ;;  %s148_s4 = int_to_ptr.vmem [resolvable:$true] %s147_s4 }
  0x16   : > { %p416_p1 = scmp.ge.s32.totalorder %s649_s14, 1  ;;  %s136_s6 = scalar_lea.sflag [#allocation3], %s737_s25 }
  0x17   : > { %p511_p2 = pneg %p746_p0  ;;  %s522_s7 = scalar_lea.vmem %s148_s4, 128 }
  0x18   : > { %p523_p3 = scmp.ne.s32.totalorder %s148_s4, %s522_s7  ;;  %s651_s8 = smov [#allocation2]  }
  0x19   : > { %s527_s15 = sshll.u32 %s651_s8, 4  ;;  %s528_s15 = int_to_ptr.vmem [resolvable:$false] %s527_s15 }
  0x1a   : > { %p525_p5 = pnand %p523_p3, %p511_p2  ;;  %s529_s16 = scalar_lea.vmem %s528_s15, 256 }
  0x1b   : > { %p530_p4 = scmp.lt.s32.totalorder %s148_s4, %s528_s15  ;;  %p531_p7 = scmp.lt.s32.totalorder %s529_s16, %s522_s7 }
  0x1c   : > { %p526_p6 = pneg %p525_p5 }
  0x1d   : > { %p532_p10 = por %p531_p7, %p530_p4 }
  0x1f   : > { %p533_p13 = pnand %p532_p10, %p526_p6 }
  0x21   : > { %536 = shalt.err (!%p533_p13)
}
  0x22   : > { %s652_s18 = smov 32   ;;  %s653_s19 = smov 2  }
  0x23   : > { %438 = dma.hbm_to_vmem [thread:$0]  (!%p746_p0), %s146_s30, 128, %s148_s4, %s136_s6, %s652_s18, %s652_s18, %s653_s19  }
  0x24   : > { %p174_p3 = scmp.lt.s32.totalorder %s649_s14, 3  ;;  %s414_s20 = sshll.u32 %s737_s25, 1 }
  0x25   : > { %s415_s26 = sshll.u32 %s645_s13, 5  ;;  %s161_s7 = scalar_lea.vmem [#allocation5], %s414_s20 }
  0x26   : > { %p764_p5 = pnand %p416_p1, %p174_p3  ;;  %s167_s3 = scalar_lea.hbm %s855_s1, %s415_s26 }
  0x27   : > { %s169_s8 = sshll.u32 %s161_s7, 4  ;;  %s158_s15 = scalar_lea.sflag [#allocation6], %s737_s25  ;;  %s170_s8 = int_to_ptr.vmem [resolvable:$true] %s169_s8 }
  0x28   : > { %s550_s16 = scalar_lea.vmem %s170_s8, 32  ;;  %s654_s30 = smov [#allocation5]  }
  0x29   : > { %p551_p6 = scmp.ne.s32.totalorder %s170_s8, %s550_s16  ;;  %s555_s4 = sshll.u32 %s654_s30, 4  ;;  %s556_s4 = int_to_ptr.vmem [resolvable:$false] %s555_s4 }
  0x2a   : > { %s557_s6 = scalar_lea.vmem %s556_s4, 64  ;;  %p558_p1 = scmp.lt.s32.totalorder %s170_s8, %s556_s4 }
  0x2b   : > { %p553_p4 = pnand %p551_p6, %p511_p2  ;;  %p559_p10 = scmp.lt.s32.totalorder %s557_s6, %s550_s16 }
  0x2d   : > { %p554_p7 = pneg %p553_p4  ;;  %p560_p13 = por %p559_p10, %p558_p1 }
  0x2f   : > { %p561_p3 = pnand %p560_p13, %p554_p7 }
  0x31   : > { %564 = shalt.err (!%p561_p3)
}
  0x32   : > { %441 = dma.hbm_to_vmem [thread:$0]  (!%p746_p0), %s167_s3, 32, %s170_s8, %s158_s15  }
  0x33   : > { %178 = sbr.rel (%p764_p5) target bundleno = 138 (0x8a), region = 28  ;;  %s780_s25 = sand.u32 (!%p764_p5), 1, %s633_s10  }
  0x34   : > { %s417_s18 = sshll.u32 (!%p764_p5), %s780_s25, 3  ;;  %s181_s19 = scalar_lea.sflag (!%p764_p5), [#allocation3], %s780_s25 }
  0x35   : > { %s184_s20 = scalar_lea.vmem (!%p764_p5), [#allocation2], %s417_s18 }
  0x38   : > { %616 = dma.done.wait (%p719_p8), %s181_s19, 128  }
  0x39   : > { %618 = vsyncadd (%p719_p8), %s181_s19, 4294967168  ;;  %s418_s5 = sshll.u32 %s780_s25, 1  ;;  %s190_s26 = scalar_lea.sflag [#allocation6], %s780_s25 }
  0x3a   : > { %s193_s27 = scalar_lea.vmem [#allocation5], %s418_s5 }
  0x3b   : > { %620 = dma.done.wait (%p719_p8), %s190_s26, 32  }
  0x3c   : > { %622 = vsyncadd (%p719_p8), %s190_s26, 4294967264  ;;  %v223_v0 = vld [vmem:[%s184_s20] sm:$0x3]  ;;  %v420_v1 = vld [vmem:[%s184_s20 + $0x2] sm:$0x3]  ;;  %vm265_vm6 = vcmask 1041408   ;;  %v282_v44 = vlaneseq }
  0x3d   : > { %v226_v2 = vmax.f32 %v223_v0, %v420_v1  ;;  %v421_v3 = vld [vmem:[%s184_s20 + $0x4] sm:$0x3]  ;;  %v422_v4 = vld [vmem:[%s184_s20 + $0x6] sm:$0x3]  ;;  %v219_v20 = vld [vmem:[%s193_s27] sm:$0x3] }
  0x3e   : > { %vm220_vm0 = vcmp.ge.s32.totalorder %v219_v20, 0  ;;  %vm221_vm1 = vcmp.ne.s32.totalorder %v219_v20, 255  ;;  %vm237_vm2 = vcmp.eq.s32.totalorder %v219_v20, 0  ;;  %vm244_vm3 = vcmp.eq.s32.totalorder %v219_v20, 1  ;;  %s218_s21 = scalar_lea.vmem [#allocation7], %s418_s5  ;;  %s425_s29 = sshll.u32 %s641_s12, 5 }
  0x3f   : > { %v229_v5 = vmax.f32 %v226_v2, %v421_v3  ;;  %vm796_vm4 = vmand %vm220_vm0, %vm221_vm1  ;;  %vm251_vm5 = vcmp.eq.s32.totalorder %v219_v20, 2  ;;  %v655_v26 = vmov 0.0   ;;  %vm258_vm7 = vcmp.eq.s32.totalorder %v219_v20, 3  ;;  %s302_s28 = sshll.u32 %s218_s21, 4  ;;  %s300_s8 = scalar_lea.hbm %s856_s2, %s425_s29  ;;  %s809_s28 = int_to_ptr.vmem [resolvable:$true] %s302_s28 }
  0x40   : > { %v423_v27 = vsel %vm796_vm4, 1.0, %v655_v26  ;;  %v283_v48 = vshrl.u32 %v282_v44, 7  ;;  %s288_s15 = scalar_lea.sflag [#allocation4], %s780_s25  ;;  %s565_s16 = scalar_lea.vmem %s809_s28, 32 }
  0x41   : > { %v232_v6 = vmax.f32 %v229_v5, %v422_v4  ;;  %v275_v30 = vsel %vm265_vm6, %v423_v27, 0.0  ;;  %p566_p8 = scmp.ne.s32.totalorder %s809_s28, %s565_s16  ;;  %s656_s12 = smov [#allocation7]  }
  0x42   : > { %v276_v32 = vrot.slane %v275_v30, 4  ;;  %vm284_vm8 = vcmp.eq.s32.totalorder %v283_v48, 0  ;;  %s569_s30 = sshll.u32 %s656_s12, 4  ;;  %s570_s30 = int_to_ptr.vmem [resolvable:$false] %s569_s30 }
  0x43   : > { %v233_v7 = vsub.f32 %v223_v0, %v232_v6  ;;  %v240_v8 = vsub.f32 %v420_v1, %v232_v6  ;;  %v247_v9 = vsub.f32 %v421_v3, %v232_v6  ;;  %v254_v10 = vsub.f32 %v422_v4, %v232_v6  ;;  %p567_p0 = pnand %p566_p8, %p723_p9  ;;  %s571_s4 = scalar_lea.vmem %s570_s30, 64 }
  0x44   : > { %v277_v35 = vadd.f32 %v276_v32, %v275_v30  ;;  %p572_p5 = scmp.lt.s32.totalorder %s809_s28, %s570_s30  ;;  %p573_p6 = scmp.lt.s32.totalorder %s571_s4, %s565_s16 }
  0x45   : > { %v234_v11 = vmul.f32 1.442695, %v233_v7  ;;  %v241_v12 = vmul.f32 1.442695, %v240_v8  ;;  %v248_v13 = vmul.f32 1.442695, %v247_v9  ;;  %p568_p2 = pneg %p567_p0 }
  0x46   : > { %v255_v14 = vmul.f32 1.442695, %v254_v10  ;;  %v238_v24 = vsel %vm237_vm2, %v233_v7, 0.0  ;;  %v245_v25 = vsel %vm244_vm3, %v240_v8, 0.0  ;;  %v252_v29 = vsel %vm251_vm5, %v247_v9, 0.0  ;;  %p574_p4 = por %p573_p6, %p572_p5 }
  0x47   : > { %499 = vpow2.f32 %v234_v11  ;;  %v246_v28 = vadd.f32 %v245_v25, %v238_v24  ;;  %v259_v33 = vsel %vm258_vm7, %v254_v10, 0.0  ;;  %v278_v39 = vrot.slane %v277_v35, 2 }
  0x48   : > { %501 = vpow2.f32 %v241_v12  ;;  %p575_p7 = pnand %p574_p4, %p568_p2 }
  0x49   : > { %503 = vpow2.f32 %v248_v13  ;;  %v253_v31 = vadd.f32 %v252_v29, %v246_v28  ;;  %v279_v43 = vadd.f32 %v278_v39, %v277_v35 }
  0x4a   : > { %505 = vpow2.f32 %v255_v14 }
  0x4b   : > { %v260_v34 = vadd.f32 %v259_v33, %v253_v31  ;;  %v280_v47 = vrot.slane %v279_v43, 1 }
  0x4d   : > { %v281_v51 = vadd.f32 %v280_v47, %v279_v43 }
  0x54   : > { %v500_v15 = vpop.eup %499 }
  0x55   : > { %v502_v16 = vpop.eup %501 }
  0x56   : > { %v504_v17 = vpop.eup %503  ;;  %v243_v18 = vadd.f32 %v502_v16, %v500_v15 }
  0x57   : > { %v506_v19 = vpop.eup %505 }
  0x58   : > { %v250_v21 = vadd.f32 %v504_v17, %v243_v18 }
  0x5a   : > { %v257_v22 = vadd.f32 %v506_v19, %v250_v21 }
  0x5c   : > { %507 = vlog2.f32 %v257_v22 }
  0x69   : > { %v508_v36 = vpop.eup %507 }
  0x6a   : > { %v262_v37 = vmul.f32 0.6931472, %v508_v36 }
  0x6c   : > { %v263_v38 = vsub.f32 %v262_v37, %v260_v34 }
  0x6e   : > { %v264_v40 = vsel %vm796_vm4, %v263_v38, 0.0 }
  0x6f   : > { %v266_v41 = vsel %vm265_vm6, %v264_v40, 0.0 }
  0x70   : > { %v267_v42 = vrot.slane %v266_v41, 4 }
  0x72   : > { %v268_v45 = vadd.f32 %v267_v42, %v266_v41 }
  0x74   : > { %v269_v46 = vrot.slane %v268_v45, 2 }
  0x76   : > { %v270_v49 = vadd.f32 %v269_v46, %v268_v45 }
  0x78   : > { %v271_v50 = vrot.slane %v270_v49, 1 }
  0x7a   : > { %v272_v52 = vadd.f32 %v271_v50, %v270_v49 }
  0x7c   : > { %v285_v53 = vsel %vm284_vm8, %v272_v52, %v281_v51 }
  0x7d   : > { %286 = vst [vmem:[%s218_s21] sm:$0x3] %v285_v53 }
  0x7e   : > { %578 = shalt.err (!%p575_p7)
}
  0x7f   : > { %s579_s6 = scalar_lea.hbm %s300_s8, 32  ;;  %s583_s19 = scalar_lea.hbm %s856_s2, 64 }
  0x80   : > { %p580_p1 = scmp.ne.s32.totalorder %s300_s8, %s579_s6  ;;  %p584_p3 = scmp.lt.s32.totalorder %s300_s8, %s856_s2 }
  0x81   : > { %p585_p8 = scmp.lt.s32.totalorder %s583_s19, %s579_s6 }
  0x82   : > { %p581_p10 = pnand %p580_p1, %p723_p9 }
  0x83   : > { %p586_p0 = por %p585_p8, %p584_p3 }
  0x84   : > { %p582_p13 = pneg %p581_p10 }
  0x86   : > { %p587_p12 = pnand %p586_p0, %p582_p13 }
  0x88   : > { %590 = shalt.err (!%p587_p12)
}
  0x89   : > { %433 = dma.vmem_to_hbm [thread:$0]  (%p723_p9), %s809_s28, 32, %s300_s8, %s288_s15  }
  0x8a PF: > { %s314_s26 = sand.u32 1, %s629_s9   ;;  %p865_p2 = scmp.ge.s32.totalorder %s649_s14, 2 }
  0x8b   : > { %s315_s27 = scalar_lea.sflag [#allocation4], %s314_s26 }
  0x8c   : > { %p443_p5 = pnand %p865_p2, %p730_p11 }
  0x8e   : > { %p444_p6 = pneg %p443_p5 }
  0x90   : > { %624 = dma.done.wait (%p444_p6), %s315_s27, 32  }
  0x91   : > { %626 = vsyncadd (%p444_p6), %s315_s27, 4294967264  ;;  %s21_s14 = sadd.s32 1, %s649_s14   ;;  %s866_s9 = smov %s633_s10 }
  0x92   : > { %p18_p4 = scmp.ge.s32.totalorder %s21_s14, 4   ;;  %s867_s10 = smov %s637_s11 }
  0x93   : > { %s868_s11 = smov %s728_s23  ;;  %s869_s12 = smov %s645_s13 }
  0x94   : > { %s870_s13 = smov %s872_s17  ;;  %20 = sbr.rel (!%p18_p4) target bundleno = 8 (0x8), region = 89 }
  0x99   :  { %320 = vsyncpa [#allocation3], 1 }
  0x9a   :  { %322 = vsyncpa [#allocation3 + $0x1], 1 }
  0x9b   :  { %323 = vsyncpa [#allocation6], 1 }
  0x9c   :  { %325 = vsyncpa [#allocation6 + $0x1], 1 }
  0x9d   :  { %326 = vsyncpa [#allocation4], 1 }
  0x9e   :  { %328 = vsyncpa [#allocation4 + $0x1], 1 }

</bundles_post_ra>
